<compile_context>
chip_gen: v7x
topology: tpu7x:2x2x1
jax: 0.10.0
libtpu: 0.0.40
codegen_flags: <defaults>
</compile_context>

<pallas_src>
import functools

import jax
import jax.numpy as jnp
import numpy as np
from jax.experimental import pallas as pl
from jax.experimental.pallas import tpu as pltpu

_MiB = 1024 * 1024


def _sdpa_kernel(q_ref, k_ref, v_ref, *rest, inv_temperature, has_mask):
    # q_ref: (1, G, Lq, D); k_ref/v_ref: (1, G, Lk, D)
    # mask_ref (optional): (1, 1|G, Lq, Lk); o_ref: (1, Lq, G*D)
    if has_mask:
        mask_ref, o_ref = rest
    else:
        (o_ref,) = rest

    G = q_ref.shape[1]

    # Scale q by the precomputed reciprocal in its native dtype (no f32 upcast before
    # the MXU; accumulation is f32 via preferred_element_type).
    q = q_ref[0] * inv_temperature              # (G, Lq, D), native dtype
    k = k_ref[0]                                # (G, Lk, D), native dtype

    # scores[g, q, k] = sum_d q[g,q,d] * k[g,k,d]   -> (G, Lq, Lk), f32 accumulation
    scores = jnp.einsum("gqd,gkd->gqk", q, k, preferred_element_type=jnp.float32)

    if has_mask:
        # mask_ref[0] is (1, Lq, Lk) or (G, Lq, Lk); both broadcast against scores.
        scores = scores + mask_ref[0].astype(jnp.float32)

    # Numerically-stable softmax numerator; normalization deferred to after PV.
    m = jnp.max(scores, axis=-1, keepdims=True)
    p = jnp.exp(scores - m)                     # (G, Lq, Lk), f32, unnormalized
    denom = jnp.sum(p, axis=-1, keepdims=True)  # (G, Lq, 1)
    inv_denom = pl.reciprocal(denom, approx=False)

    # dropout: identity (eval mode)

    v = v_ref[0]                                # (G, Lk, D)

    # Per-head PV matmul (MXU serializes batched matmuls anyway).  Cast p per head and
    # scale/cast each head's output to the output dtype BEFORE the concat so the live
    # probability buffer and concat operands stay narrow.  The G heads are packed along
    # the lane dim for a lane-dense (Lq, G*D) store.
    outs = []
    for g in range(G):
        p_g = p[g].astype(v.dtype)              # matches reference attn.to(v.dtype)
        out_g = jnp.dot(p_g, v[g], preferred_element_type=jnp.float32)   # (Lq, D)
        outs.append((out_g * inv_denom[g]).astype(o_ref.dtype))
    out = outs[0] if G == 1 else jnp.concatenate(outs, axis=-1)          # (Lq, G*D)

    o_ref[0] = out


def _chip_profile():
    """(num_tensorcores_sharing_the_parallel_axis, physical VMEM bytes per core)."""
    kind = ""
    try:
        kind = jax.devices()[0].device_kind.lower()
    except Exception:
        pass

    if "7" in kind:                                   # v7x: 2 TC/chip, 64 MiB VMEM/TC
        cores, phys = 2, 64 * _MiB
    elif "v6" in kind or "6e" in kind:                # v6e: 1 TC, 128 MiB
        cores, phys = 1, 128 * _MiB
    elif "v5e" in kind or "v5 lite" in kind or "v5lite" in kind:   # v5e: 1 TC, 128 MiB
        cores, phys = 1, 128 * _MiB
    elif "v5" in kind or "v4" in kind:                # v4/v5p megacore: 2 cores
        cores, phys = 2, 128 * _MiB
    elif "v2" in kind or "v3" in kind:
        cores, phys = 1, 16 * _MiB
    else:                                             # unknown: be conservative (v7x-ish)
        cores, phys = 2, 64 * _MiB

    try:
        cap = getattr(pltpu.get_tpu_info(), "vmem_capacity_bytes", None)
        if cap:
            phys = int(cap)
    except Exception:
        pass
    return cores, phys


def _working_set_bytes(g, seq_q, seq_kv, head_dim, itemsize, out_itemsize,
                       mask_mode, mask_itemsize):
    """Per-step VMEM working set for head-block size g (double-buffered blocks +
    f32 scores/prob intermediates + the mask block, previously unaccounted)."""
    qkv = 2 * g * (seq_q + 2 * seq_kv) * head_dim * itemsize
    out = 2 * seq_q * g * head_dim * out_itemsize
    scores = 2 * g * seq_q * seq_kv * 4
    if mask_mode in ("shared", "batch"):
        msk = 2 * seq_q * seq_kv * mask_itemsize
    elif mask_mode == "full":
        msk = 2 * g * seq_q * seq_kv * mask_itemsize
    else:
        msk = 0
    return qkv + out + scores + msk


def _choose_head_block(num_heads, heads_per_batch, seq_q, seq_kv, head_dim,
                       itemsize, out_itemsize, mask_mode, mask_itemsize,
                       budget_bytes, cores):
    """Pick G (heads per grid step).  Preference order among G that fit the VMEM
    budget: (1) step count is a multiple of the TC count (only matters when cores>1,
    i.e. v7x / megacore; on v5e/v6e any step count is 'balanced' so G may reach B*H),
    (2) lane-dense output (G*D % 128 == 0, unmasked full-width stores), (3) largest G
    (fewest grid steps / biggest DMAs)."""
    best_g, best_key = 1, None
    for g in range(1, num_heads + 1):
        if num_heads % g:
            continue
        if mask_mode == "batch" and heads_per_batch % g:
            continue  # a grid step must stay inside one batch for the per-batch mask
        if _working_set_bytes(g, seq_q, seq_kv, head_dim, itemsize, out_itemsize,
                              mask_mode, mask_itemsize) > budget_bytes:
            continue
        steps = num_heads // g
        balanced = (cores <= 1) or (steps >= cores and steps % cores == 0)
        lane_dense = (g * head_dim) % 128 == 0
        key = (balanced, lane_dense, g)
        if best_key is None or key > best_key:
            best_g, best_key = g, key
    return best_g


def scaled_dot_product_attention(q, k, v, temperature, mask=None, *,
                                 head_block=None, vmem_limit_bytes=None):
    """q, k, v: [B, H, L, D].  mask: None or additive, broadcastable to [B, H, Lq, Lk]
    with trailing dims exactly (Lq, Lk) — same contract as the PyTorch module."""
    B, H, Lq, D = q.shape
    Lk = k.shape[2]
    assert k.shape == (B, H, Lk, D) and v.shape == (B, H, Lk, D)

    BH = B * H
    itemsize = jnp.dtype(q.dtype).itemsize
    out_itemsize = jnp.dtype(v.dtype).itemsize

    # ---- classify the mask so it is never replicated more than necessary -------------
    has_mask = mask is not None
    mask_mode = "none"
    mask_itemsize = 0
    if has_mask:
        mask = jnp.asarray(mask)
        assert mask.shape[-2:] == (Lq, Lk), "mask trailing dims must equal (Lq, Lk)"
        while mask.ndim < 4:
            mask = mask[None]
        assert mask.ndim == 4
        mb, mh = mask.shape[0], mask.shape[1]
        assert mb in (1, B) and mh in (1, H), "mask must broadcast to (B, H, Lq, Lk)"
        mask_itemsize = jnp.dtype(mask.dtype).itemsize
        if mb == 1 and mh == 1:
            mask_mode = "shared"     # one (Lq, Lk) copy resident for every step
        elif mh == 1:
            mask_mode = "batch"      # (B, 1, Lq, Lk), grid-indexed per batch
        else:
            mask_mode = "full"       # varies per head -> must materialize per step

    # ---- chip-aware head-block / VMEM shaping -----------------------------------------
    cores, phys_vmem = _chip_profile()
    budget = int(phys_vmem * 0.7)    # leave headroom for compiler-internal scratch

    if head_block is not None:
        G = int(head_block)
        assert BH % G == 0, "head_block must divide B*H"
    else:
        G = _choose_head_block(BH, H, Lq, Lk, D, itemsize, out_itemsize,
                               mask_mode, mask_itemsize, budget, cores)
    if mask_mode == "batch" and H % G != 0:
        mask_mode = "full"           # caller-supplied G spans batches -> safe fallback
    num_steps = BH // G

    # Fold G heads per grid step (contiguous reshape, no data movement).
    qf = q.reshape(num_steps, G, Lq, D)
    kf = k.reshape(num_steps, G, Lk, D)
    vf = v.reshape(num_steps, G, Lk, D)

    in_specs = [
        pl.BlockSpec((1, G, Lq, D), lambda i: (i, 0, 0, 0)),
        pl.BlockSpec((1, G, Lk, D), lambda i: (i, 0, 0, 0)),
        pl.BlockSpec((1, G, Lk, D), lambda i: (i, 0, 0, 0)),
    ]
    inputs = [qf, kf, vf]

    mask_hbm_bytes = 0
    if has_mask:
        if mask_mode == "shared":
            maskf = mask                                           # (1, 1, Lq, Lk)
            in_specs.append(pl.BlockSpec((1, 1, Lq, Lk), lambda i: (0, 0, 0, 0)))
        elif mask_mode == "batch":
            maskf = mask                                           # (B, 1, Lq, Lk)
            # G | H, so flat heads [i*G, (i+1)*G) all belong to batch (i*G)//H.
            in_specs.append(pl.BlockSpec((1, 1, Lq, Lk),
                                         lambda i: ((i * G) // H, 0, 0, 0)))
        else:  # "full": per-head mask, unavoidable replication
            maskf = jnp.broadcast_to(mask, (B, H, Lq, Lk)).reshape(num_steps, G, Lq, Lk)
            in_specs.append(pl.BlockSpec((1, G, Lq, Lk), lambda i: (i, 0, 0, 0)))
        inputs.append(maskf)
        mask_hbm_bytes = int(np.prod(maskf.shape)) * mask_itemsize

    # Always emit a VMEM limit derived from the actual working set (per-chip physical
    # ceiling), instead of relying on the 16/32 MiB default scoped limits.
    if vmem_limit_bytes is None:
        ws = _working_set_bytes(G, Lq, Lk, D, itemsize, out_itemsize,
                                mask_mode, mask_itemsize)
        limit = max(ws + 16 * _MiB, 32 * _MiB)
        limit = min(limit, max(phys_vmem - 8 * _MiB, phys_vmem // 2))
        vmem_limit_bytes = int(limit)

    cost = pl.CostEstimate(
        flops=4 * BH * Lq * Lk * D,            # QK^T + PV matmuls
        transcendentals=BH * Lq * Lk,          # exp
        bytes_accessed=((q.size + k.size + v.size) * itemsize
                        + BH * Lq * D * out_itemsize + mask_hbm_bytes),
    )

    kernel = functools.partial(
        _sdpa_kernel,
        inv_temperature=1.0 / float(temperature),
        has_mask=has_mask,
    )

    out = pl.pallas_call(
        kernel,
        out_shape=jax.ShapeDtypeStruct((num_steps, Lq, G * D), v.dtype),
        grid_spec=pltpu.PrefetchScalarGridSpec(
            num_scalar_prefetch=0,
            grid=(num_steps,),
            in_specs=in_specs,
            out_specs=pl.BlockSpec((1, Lq, G * D), lambda i: (i, 0, 0)),
        ),
        compiler_params=pltpu.CompilerParams(
            dimension_semantics=("parallel",),
            vmem_limit_bytes=int(vmem_limit_bytes),
        ),
        cost_estimate=cost,
    )(*inputs)

    # Unpack the lane-dense (Lq, G*D) slabs back to [B, H, Lq, D] (wrapper-side layout
    # plumbing; heads were packed g-major along the last dim).
    out = out.reshape(num_steps, Lq, G, D)
    out = jnp.transpose(out, (0, 2, 1, 3))
    return out.reshape(B, H, Lq, D)


def _reference(q, k, v, temperature, mask=None):
    qf = q.astype(jnp.float32)
    kf = k.astype(jnp.float32)
    attn = jnp.einsum("bhqd,bhkd->bhqk", qf / temperature, kf)
    if mask is not None:
        attn = attn + mask.astype(jnp.float32)
    attn = jax.nn.softmax(attn, axis=-1)
    return jnp.einsum("bhqk,bhkd->bhqd", attn.astype(v.dtype), v)


if __name__ == "__main__":
    B, H, L, D = 2, 4, 8, 32
    temperature = float(np.sqrt(D))

    key = jax.random.PRNGKey(0)
    kq, kk, kv, km = jax.random.split(key, 4)
    q = jax.random.normal(kq, (B, H, L, D), dtype=jnp.float32)
    k = jax.random.normal(kk, (B, H, L, D), dtype=jnp.float32)
    v = jax.random.normal(kv, (B, H, L, D), dtype=jnp.float32)

    causal = jnp.where(
        jnp.tril(jnp.ones((L, L), dtype=bool)), 0.0, -1e9
    ).astype(jnp.float32)[None, None, :, :]

    # 1) fully shared causal mask (single resident (Lq, Lk) copy)
    out1 = jax.block_until_ready(
        scaled_dot_product_attention(q, k, v, temperature, mask=causal))
    ref1 = _reference(q, k, v, temperature, mask=causal)
    np.testing.assert_allclose(np.asarray(out1), np.asarray(ref1), rtol=1e-5, atol=1e-5)

    # 2) per-batch padding mask: stays (B, 1, Lq, Lk), grid-indexed (no H-fold copy)
    keep = jax.random.uniform(km, (B, 1, 1, L)) > 0.3
    pad_mask = jnp.broadcast_to(
        jnp.where(keep, 0.0, -1e9).astype(jnp.float32), (B, 1, L, L))
    out2 = jax.block_until_ready(
        scaled_dot_product_attention(q, k, v, temperature, mask=pad_mask))
    ref2 = _reference(q, k, v, temperature, mask=pad_mask)
    np.testing.assert_allclose(np.asarray(out2), np.asarray(ref2), rtol=1e-5, atol=1e-5)

    # 3) no mask
    out3 = jax.block_until_ready(
        scaled_dot_product_attention(q, k, v, temperature, mask=None))
    ref3 = _reference(q, k, v, temperature, mask=None)
    np.testing.assert_allclose(np.asarray(out3), np.asarray(ref3), rtol=1e-5, atol=1e-5)

    # 4) per-head bias mask (exercises the "full" per-step mask path)
    head_bias = jax.random.normal(jax.random.PRNGKey(1), (1, H, L, L), dtype=jnp.float32)
    out4 = jax.block_until_ready(
        scaled_dot_product_attention(q, k, v, temperature, mask=head_bias))
    ref4 = _reference(q, k, v, temperature, mask=head_bias)
    np.testing.assert_allclose(np.asarray(out4), np.asarray(ref4), rtol=1e-5, atol=1e-5)

    # 5) bf16 smoke test (unnormalized-p -> bf16 cast path; loose tolerance)
    qb, kb, vb = (x.astype(jnp.bfloat16) for x in (q, k, v))
    out5 = jax.block_until_ready(
        scaled_dot_product_attention(qb, kb, vb, temperature, mask=causal))
    ref5 = _reference(qb, kb, vb, temperature, mask=causal)
    np.testing.assert_allclose(np.asarray(out5.astype(jnp.float32)),
                               np.asarray(ref5.astype(jnp.float32)),
                               rtol=8e-2, atol=8e-2)

    print("KERNEL_OK")
</pallas_src>

<mosaic_0001>
module attributes {stable_mosaic.version = 11 : i64} {
  func.func @_sdpa_kernel(%arg0: i32, %arg1: memref<1x4x8x32xf32, #tpu.memory_space<vmem>>, %arg2: memref<1x4x8x32xf32, #tpu.memory_space<vmem>>, %arg3: memref<1x4x8x32xf32, #tpu.memory_space<vmem>>, %arg4: memref<1x1x8x8xf32, #tpu.memory_space<vmem>>, %arg5: memref<1x8x128xf32, #tpu.memory_space<vmem>>) attributes {dimension_semantics = [#tpu.dimension_semantics<parallel>], iteration_bounds = array<i64: 2>, scalar_prefetch = 0 : i64, scratch_operands = 0 : i64, tpu.core_type = #tpu.core_type<tc>, window_params = [{transform_indices = @transform_0, window_bounds = array<i64: 1, 4, 8, 32>}, {transform_indices = @transform_1, window_bounds = array<i64: 1, 4, 8, 32>}, {transform_indices = @transform_2, window_bounds = array<i64: 1, 4, 8, 32>}, {pipeline_mode = #tpu.pipeline_mode<synchronous>, transform_indices = @transform_3, window_bounds = array<i64: 1, 1, 8, 8>}, {transform_indices = @transform_4, window_bounds = array<i64: 1, 8, 128>}]} {
    %c0 = arith.constant 0 : index
    %c0_0 = arith.constant 0 : index
    %c0_1 = arith.constant 0 : index
    %c0_2 = arith.constant 0 : index
    %0 = vector.load %arg1[%c0, %c0_0, %c0_1, %c0_2] : memref<1x4x8x32xf32, #tpu.memory_space<vmem>>, vector<1x4x8x32xf32>
    %1 = vector.shape_cast %0 : vector<1x4x8x32xf32> to vector<4x8x32xf32>
    %cst = arith.constant 0.176776692 : f32
    %2 = vector.broadcast %cst : f32 to vector<4x8x32xf32>
    %3 = arith.mulf %1, %2 : vector<4x8x32xf32>
    %c0_3 = arith.constant 0 : index
    %c0_4 = arith.constant 0 : index
    %c0_5 = arith.constant 0 : index
    %c0_6 = arith.constant 0 : index
    %4 = vector.load %arg2[%c0_3, %c0_4, %c0_5, %c0_6] : memref<1x4x8x32xf32, #tpu.memory_space<vmem>>, vector<1x4x8x32xf32>
    %5 = vector.shape_cast %4 : vector<1x4x8x32xf32> to vector<4x8x32xf32>
    "tpu.trace_start"() <{level = 10 : i32, message = "gqd,gkd->gqk"}> : () -> ()
    %cst_7 = arith.constant dense<0.000000e+00> : vector<4x8x8xf32>
    %6 = tpu.matmul %3, %5, %cst_7 {dimension_numbers = #tpu.dot_dimension_numbers<[2], [2], [1], [1], [0, 0, 0, 1, 1, 1], [0], [0]>} : vector<4x8x32xf32>, vector<4x8x32xf32>, vector<4x8x8xf32> -> vector<4x8x8xf32>
    "tpu.trace_stop"() : () -> ()
    %c0_8 = arith.constant 0 : index
    %c0_9 = arith.constant 0 : index
    %c0_10 = arith.constant 0 : index
    %c0_11 = arith.constant 0 : index
    %7 = vector.load %arg4[%c0_8, %c0_9, %c0_10, %c0_11] : memref<1x1x8x8xf32, #tpu.memory_space<vmem>>, vector<1x1x8x8xf32>
    %8 = vector.shape_cast %7 : vector<1x1x8x8xf32> to vector<1x8x8xf32>
    %9 = vector.broadcast %8 : vector<1x8x8xf32> to vector<4x8x8xf32>
    %10 = arith.addf %6, %9 : vector<4x8x8xf32>
    %cst_12 = arith.constant dense<0xFF800000> : vector<4x8xf32>
    %11 = vector.multi_reduction <maximumf>, %10, %cst_12 [2] : vector<4x8x8xf32> to vector<4x8xf32>
    %12 = vector.shape_cast %11 : vector<4x8xf32> to vector<4x8x1xf32>
    %13 = vector.broadcast %12 : vector<4x8x1xf32> to vector<4x8x8xf32>
    %14 = arith.subf %10, %13 : vector<4x8x8xf32>
    %15 = math.exp %14 : vector<4x8x8xf32>
    %cst_13 = arith.constant dense<0.000000e+00> : vector<4x8xf32>
    %16 = vector.multi_reduction <add>, %15, %cst_13 [2] : vector<4x8x8xf32> to vector<4x8xf32>
    %17 = vector.shape_cast %16 : vector<4x8xf32> to vector<4x8x1xf32>
    %18 = tpu.reciprocal %17 : vector<4x8x1xf32> -> vector<4x8x1xf32>
    %c0_14 = arith.constant 0 : index
    %c0_15 = arith.constant 0 : index
    %c0_16 = arith.constant 0 : index
    %c0_17 = arith.constant 0 : index
    %19 = vector.load %arg3[%c0_14, %c0_15, %c0_16, %c0_17] : memref<1x4x8x32xf32, #tpu.memory_space<vmem>>, vector<1x4x8x32xf32>
    %20 = vector.shape_cast %19 : vector<1x4x8x32xf32> to vector<4x8x32xf32>
    %21 = vector.extract_strided_slice %15 {offsets = [0, 0, 0], sizes = [1, 8, 8], strides = [1, 1, 1]} : vector<4x8x8xf32> to vector<1x8x8xf32>
    %22 = vector.shape_cast %21 : vector<1x8x8xf32> to vector<8x8xf32>
    %23 = vector.extract_strided_slice %20 {offsets = [0, 0, 0], sizes = [1, 8, 32], strides = [1, 1, 1]} : vector<4x8x32xf32> to vector<1x8x32xf32>
    %24 = vector.shape_cast %23 : vector<1x8x32xf32> to vector<8x32xf32>
    %cst_18 = arith.constant dense<0.000000e+00> : vector<8x32xf32>
    %25 = tpu.matmul %22, %24, %cst_18 {dimension_numbers = #tpu.dot_dimension_numbers<[1], [0], [0], [1], [0, 0, 1, 1], [], []>} : vector<8x8xf32>, vector<8x32xf32>, vector<8x32xf32> -> vector<8x32xf32>
    %26 = vector.extract_strided_slice %18 {offsets = [0, 0, 0], sizes = [1, 8, 1], strides = [1, 1, 1]} : vector<4x8x1xf32> to vector<1x8x1xf32>
    %27 = vector.shape_cast %26 : vector<1x8x1xf32> to vector<8x1xf32>
    %28 = vector.broadcast %27 : vector<8x1xf32> to vector<8x32xf32>
    %29 = arith.mulf %25, %28 : vector<8x32xf32>
    %30 = vector.extract_strided_slice %15 {offsets = [1, 0, 0], sizes = [1, 8, 8], strides = [1, 1, 1]} : vector<4x8x8xf32> to vector<1x8x8xf32>
    %31 = vector.shape_cast %30 : vector<1x8x8xf32> to vector<8x8xf32>
    %32 = vector.extract_strided_slice %20 {offsets = [1, 0, 0], sizes = [1, 8, 32], strides = [1, 1, 1]} : vector<4x8x32xf32> to vector<1x8x32xf32>
    %33 = vector.shape_cast %32 : vector<1x8x32xf32> to vector<8x32xf32>
    %cst_19 = arith.constant dense<0.000000e+00> : vector<8x32xf32>
    %34 = tpu.matmul %31, %33, %cst_19 {dimension_numbers = #tpu.dot_dimension_numbers<[1], [0], [0], [1], [0, 0, 1, 1], [], []>} : vector<8x8xf32>, vector<8x32xf32>, vector<8x32xf32> -> vector<8x32xf32>
    %35 = vector.extract_strided_slice %18 {offsets = [1, 0, 0], sizes = [1, 8, 1], strides = [1, 1, 1]} : vector<4x8x1xf32> to vector<1x8x1xf32>
    %36 = vector.shape_cast %35 : vector<1x8x1xf32> to vector<8x1xf32>
    %37 = vector.broadcast %36 : vector<8x1xf32> to vector<8x32xf32>
    %38 = arith.mulf %34, %37 : vector<8x32xf32>
    %39 = vector.extract_strided_slice %15 {offsets = [2, 0, 0], sizes = [1, 8, 8], strides = [1, 1, 1]} : vector<4x8x8xf32> to vector<1x8x8xf32>
    %40 = vector.shape_cast %39 : vector<1x8x8xf32> to vector<8x8xf32>
    %41 = vector.extract_strided_slice %20 {offsets = [2, 0, 0], sizes = [1, 8, 32], strides = [1, 1, 1]} : vector<4x8x32xf32> to vector<1x8x32xf32>
    %42 = vector.shape_cast %41 : vector<1x8x32xf32> to vector<8x32xf32>
    %cst_20 = arith.constant dense<0.000000e+00> : vector<8x32xf32>
    %43 = tpu.matmul %40, %42, %cst_20 {dimension_numbers = #tpu.dot_dimension_numbers<[1], [0], [0], [1], [0, 0, 1, 1], [], []>} : vector<8x8xf32>, vector<8x32xf32>, vector<8x32xf32> -> vector<8x32xf32>
    %44 = vector.extract_strided_slice %18 {offsets = [2, 0, 0], sizes = [1, 8, 1], strides = [1, 1, 1]} : vector<4x8x1xf32> to vector<1x8x1xf32>
    %45 = vector.shape_cast %44 : vector<1x8x1xf32> to vector<8x1xf32>
    %46 = vector.broadcast %45 : vector<8x1xf32> to vector<8x32xf32>
    %47 = arith.mulf %43, %46 : vector<8x32xf32>
    %48 = vector.extract_strided_slice %15 {offsets = [3, 0, 0], sizes = [1, 8, 8], strides = [1, 1, 1]} : vector<4x8x8xf32> to vector<1x8x8xf32>
    %49 = vector.shape_cast %48 : vector<1x8x8xf32> to vector<8x8xf32>
    %50 = vector.extract_strided_slice %20 {offsets = [3, 0, 0], sizes = [1, 8, 32], strides = [1, 1, 1]} : vector<4x8x32xf32> to vector<1x8x32xf32>
    %51 = vector.shape_cast %50 : vector<1x8x32xf32> to vector<8x32xf32>
    %cst_21 = arith.constant dense<0.000000e+00> : vector<8x32xf32>
    %52 = tpu.matmul %49, %51, %cst_21 {dimension_numbers = #tpu.dot_dimension_numbers<[1], [0], [0], [1], [0, 0, 1, 1], [], []>} : vector<8x8xf32>, vector<8x32xf32>, vector<8x32xf32> -> vector<8x32xf32>
    %53 = vector.extract_strided_slice %18 {offsets = [3, 0, 0], sizes = [1, 8, 1], strides = [1, 1, 1]} : vector<4x8x1xf32> to vector<1x8x1xf32>
    %54 = vector.shape_cast %53 : vector<1x8x1xf32> to vector<8x1xf32>
    %55 = vector.broadcast %54 : vector<8x1xf32> to vector<8x32xf32>
    %56 = arith.mulf %52, %55 : vector<8x32xf32>
    %57 = tpu.concatenate %29, %38, %47, %56 in 1 : vector<8x32xf32>, vector<8x32xf32>, vector<8x32xf32>, vector<8x32xf32> -> vector<8x128xf32>
    %c0_22 = arith.constant 0 : index
    %c0_23 = arith.constant 0 : index
    %c0_24 = arith.constant 0 : index
    %58 = vector.load %arg5[%c0_22, %c0_23, %c0_24] : memref<1x8x128xf32, #tpu.memory_space<vmem>>, vector<1x8x128xf32>
    %59 = vector.shape_cast %58 : vector<1x8x128xf32> to vector<8x128xf32>
    %60 = vector.shape_cast %57 : vector<8x128xf32> to vector<1x8x128xf32>
    tpu.vector_store %arg5[%c0_22, %c0_23, %c0_24], %60 {strides = array<i32>} : memref<1x8x128xf32, #tpu.memory_space<vmem>>, vector<1x8x128xf32>,
    return
  }
  func.func @transform_0(%arg0: i32) -> (i32, i32, i32, i32) {
    %c0_i32 = arith.constant 0 : i32
    %c0_i32_0 = arith.constant 0 : i32
    %c0_i32_1 = arith.constant 0 : i32
    %c0_i32_2 = arith.constant 0 : i32
    return %arg0, %c0_i32, %c0_i32_0, %c0_i32_1 : i32, i32, i32, i32
  }
  func.func @transform_1(%arg0: i32) -> (i32, i32, i32, i32) {
    %c0_i32 = arith.constant 0 : i32
    %c0_i32_0 = arith.constant 0 : i32
    %c0_i32_1 = arith.constant 0 : i32
    %c0_i32_2 = arith.constant 0 : i32
    return %arg0, %c0_i32, %c0_i32_0, %c0_i32_1 : i32, i32, i32, i32
  }
  func.func @transform_2(%arg0: i32) -> (i32, i32, i32, i32) {
    %c0_i32 = arith.constant 0 : i32
    %c0_i32_0 = arith.constant 0 : i32
    %c0_i32_1 = arith.constant 0 : i32
    %c0_i32_2 = arith.constant 0 : i32
    return %arg0, %c0_i32, %c0_i32_0, %c0_i32_1 : i32, i32, i32, i32
  }
  func.func @transform_3(%arg0: i32) -> (i32, i32, i32, i32) {
    %c0_i32 = arith.constant 0 : i32
    %c0_i32_0 = arith.constant 0 : i32
    %c0_i32_1 = arith.constant 0 : i32
    %c0_i32_2 = arith.constant 0 : i32
    %c0_i32_3 = arith.constant 0 : i32
    return %c0_i32, %c0_i32_0, %c0_i32_1, %c0_i32_2 : i32, i32, i32, i32
  }
  func.func @transform_4(%arg0: i32) -> (i32, i32, i32) {
    %c0_i32 = arith.constant 0 : i32
    %c0_i32_0 = arith.constant 0 : i32
    %c0_i32_1 = arith.constant 0 : i32
    return %arg0, %c0_i32, %c0_i32_0 : i32, i32, i32
  }
}

</mosaic_0001>

<bundles_post_ra>
// kernel: tpu_custom_call.1
= control target key start
LH: loop header
LB: loop body
LE: loop exit
PB: predicated region body
PF: predicated region fallthrough
CT: control target
= control target key end

     0   :  { %s1773_s0 = inlined_call_operand.hbm [shape: f32[2,4,8,32], index: 0, kind: input, shape index: {}]   ;;  %s1774_s1 = inlined_call_operand.hbm [shape: f32[2,4,8,32], index: 1, kind: input, shape index: {}]   ;;  %s1775_s2 = inlined_call_operand.hbm [shape: f32[2,4,8,32], index: 2, kind: input, shape index: {}]   ;;  %s1776_s3 = inlined_call_operand.vmem [shape: f32[1,1,8,8], index: 3, kind: input, shape index: {}]   ;;  %s1777_s4 = inlined_call_operand.hbm [shape: f32[2,8,128], index: 4, kind: output, shape index: {}]  }
   0x1   :  { %1784 = sst [smem:[#allocation12_spill]] %s1773_s0 }
   0x2   :  { %1785 = sst [smem:[#allocation13_spill]] %s1774_s1 }
   0x3   :  { %9 = vsyncpa [#allocation3], 0 }
   0x4   :  { %11 = vsyncpa [#allocation3 + $0x1], 0 }
   0x5   :  { %12 = vsyncpa [#allocation6], 0 }
   0x6   :  { %14 = vsyncpa [#allocation6 + $0x1], 0 }
   0x7   :  { %15 = vsyncpa [#allocation4], 0 }
   0x8   :  { %17 = vsyncpa [#allocation4 + $0x1], 0  ;;  %s1466_s15 = smov 0   ;;  %s1468_s16 = smov 0  }
   0x9   :  { %s1470_s17 = smov 0   ;;  %s1472_s18 = smov 0  }
   0xa LB: > { %s1487_s19 = sadd.s32 4294967295, %s1428_s18   ;;  %s1097_s20 = sadd.s32 4294967294, %s1428_s18   ;;  %s1428_s18 = sphi %s1472_s18, %s1805_s18   ;;  %s1424_s17 = sphi %s1470_s17, %s1804_s17   ;;  %s1420_s16 = sphi %s1468_s16, %s1803_s16   ;;  %s1416_s15 = sphi %s1466_s15, %s1802_s15  }
   0xb   : > { %s1491_s21 = sadd.s32 1, %s1428_s18   ;;  %s30_s22 = sadd.s32 1, %s1424_s17 }
   0xc   : > { %s27_s23 = ssub.s32 %s1428_s18, %s1491_s21  ;;  %p37_p0 = scmp.ne.s32.totalorder %s1424_s17, %s1420_s16 }
   0xd   : > { %p28_p1 = scmp.eq.s32.totalorder %s27_s23, 0  ;;  %p38_p2 = scmp.eq.s32.totalorder %s1428_s18, 0 }
   0xe   : > { %p43_p3 = scmp.ne.s32.totalorder %s1420_s16, %s1416_s15  ;;  %p44_p4 = scmp.eq.s32.totalorder %s1487_s19, 0 }
   0xf   : > { %s1503_s24 = scalar_select %p28_p1, %s1424_s17, %s30_s22  }
  0x10   : > { %p39_p5 = por %p38_p2, %p37_p0  ;;  %p1505_p6 = por %p44_p4, %p43_p3 }
  0x11   : > { %p140_p7 = scmp.eq.s32.totalorder %s1487_s19, 1  ;;  %p146_p8 = scmp.eq.s32.totalorder %s1097_s20, 1 }
  0x12   : > { %s1786_s25 = scalar_select %p1505_p6, 1, 0 }
  0x13   : > { %p1211_p10 = scmp.lt.s32.totalorder %s1428_s18, 2  ;;  %p1512_p11 = por %p140_p7, %p37_p0 }
  0x14   : > { %p1516_p12 = por %p146_p8, %p43_p3  ;;  %s169_s28 = sand.u32 1, %s1424_s17  }
  0x15   : > { %s1787_s26 = scalar_select %p1512_p11, 1, 0 }
  0x16   : > { %s1788_s27 = scalar_select %p1516_p12, 1, 0 }
  0x17   : > { %s1522_s29 = sshll.u32 %s1428_s18, 9  ;;  %s1526_s30 = sshll.u32 %s169_s28, 5 }
  0x18   : > { %p1528_p13 = pnand %p1211_p10, %p39_p5  ;;  %s190_s6 = sand.u32 1, %s1428_s18  }
  0x19   : > { %s1790_s1 = sld [smem:[#allocation13_spill]]  ;;  %s194_s10 = scalar_lea.vmem [#allocation5], %s1526_s30 }
  0x1a   : > { %s201_s11 = sshll.u32 %s194_s10, 4  ;;  %s1543_s12 = scalar_lea.sflag [#allocation6], %s190_s6  ;;  %s1540_s11 = int_to_ptr.vmem [resolvable:$true] %s201_s11 }
  0x1b   : > { %p1549_p2 = pneg %p1528_p13 }
  0x1f   : > { %s1537_s9 = scalar_lea.hbm %s1790_s1, %s1522_s29  ;;  %s1273_s23 = scalar_lea.hbm %s1790_s1, 1024 }
  0x20   : > { %s1268_s13 = scalar_lea.hbm %s1537_s9, 512  ;;  %p1274_p5 = scmp.lt.u32.totalorder %s1537_s9, %s1790_s1 }
  0x21   : > { %p1269_p1 = scmp.ne.s32.totalorder %s1537_s9, %s1268_s13  ;;  %p1275_p7 = scmp.lt.u32.totalorder %s1273_s23, %s1268_s13 }
  0x22   : > { %p1277_p10 = scmp.lt.u32.totalorder %s1268_s13, %s1537_s9 }
  0x23   : > { %p1271_p3 = pnand %p1549_p2, %p1269_p1  ;;  %p1276_p8 = por %p1275_p7, %p1274_p5 }
  0x25   : > { %p1272_p4 = pneg %p1271_p3  ;;  %p1278_p9 = por %p1277_p10, %p1276_p8 }
  0x27   : > { %p1279_p0 = pnand %p1278_p9, %p1272_p4 }
  0x29   : > { %1282 = shalt.err (!%p1279_p0)
}
  0x2a   : > { %s1283_s6 = scalar_lea.vmem %s1540_s11, 512  ;;  %s1430_s10 = smov [#allocation5]  }
  0x2b   : > { %p1284_p1 = scmp.ne.s32.totalorder %s1540_s11, %s1283_s6  ;;  %s1288_s20 = sshll.u32 %s1430_s10, 4  ;;  %s1289_s20 = int_to_ptr.vmem [resolvable:$false] %s1288_s20 }
  0x2c   : > { %s1290_s22 = scalar_lea.vmem %s1289_s20, 1024  ;;  %p1291_p11 = scmp.lt.s32.totalorder %s1540_s11, %s1289_s20 }
  0x2d   : > { %p1286_p3 = pnand %p1284_p1, %p1549_p2  ;;  %p1292_p6 = scmp.lt.s32.totalorder %s1290_s22, %s1283_s6 }
  0x2f   : > { %p1287_p12 = pneg %p1286_p3  ;;  %p1293_p5 = por %p1292_p6, %p1291_p11 }
  0x31   : > { %p1294_p7 = pnand %p1293_p5, %p1287_p12 }
  0x33   : > { %1297 = shalt.err (!%p1294_p7)
}
  0x34   : > { %s1780_s13 = smov 128   ;;  %s1782_s23 = smov 8  }
  0x35   : > { %1203 = dma.hbm_to_vmem [thread:$0]  (!%p1528_p13), %s1537_s9, 512, %s1540_s11, %s1543_s12, %s1780_s13, %s1780_s13, %s1782_s23  }
  0x36   : > { %p230_p6 = scmp.lt.s32.totalorder %s1428_s18, 3  ;;  %s1792_s0 = sld [smem:[#allocation12_spill]] }
  0x37   : > { %p1793_p9 = scmp.ge.s32.totalorder %s1428_s18, 1  ;;  %s173_s20 = scalar_lea.vmem [#allocation2], %s1526_s30 }
  0x38   : > { %s180_s22 = sshll.u32 %s173_s20, 4  ;;  %s1594_s9 = scalar_lea.sflag [#allocation3], %s169_s28  ;;  %s1590_s22 = int_to_ptr.vmem [resolvable:$true] %s180_s22 }
  0x39   : > { %p1585_p11 = pnand %p1793_p9, %p230_p6 }
  0x3b   : > { %s1794_s10 = scalar_select %p1585_p11, 1, 0 }
  0x3c   : > { %s1581_s6 = scalar_lea.hbm %s1792_s0, %s1522_s29  ;;  %s1303_s13 = scalar_lea.hbm %s1792_s0, 1024 }
  0x3d   : > { %s1298_s11 = scalar_lea.hbm %s1581_s6, 512  ;;  %p1304_p8 = scmp.lt.u32.totalorder %s1581_s6, %s1792_s0 }
  0x3e   : > { %p1299_p12 = scmp.ne.s32.totalorder %s1581_s6, %s1298_s11  ;;  %p1305_p10 = scmp.lt.u32.totalorder %s1303_s13, %s1298_s11 }
  0x3f   : > { %p1307_p3 = scmp.lt.u32.totalorder %s1298_s11, %s1581_s6 }
  0x40   : > { %p1301_p0 = pnand %p1299_p12, %p1549_p2  ;;  %p1306_p1 = por %p1305_p10, %p1304_p8 }
  0x42   : > { %p1302_p4 = pneg %p1301_p0  ;;  %p1308_p5 = por %p1307_p3, %p1306_p1 }
  0x44   : > { %p1309_p7 = pnand %p1308_p5, %p1302_p4 }
  0x46   : > { %1312 = shalt.err (!%p1309_p7)
}
  0x47   : > { %s1313_s28 = scalar_lea.vmem %s1590_s22, 512  ;;  %s1433_s20 = smov [#allocation2]  }
  0x48   : > { %p1314_p6 = scmp.ne.s32.totalorder %s1590_s22, %s1313_s28  ;;  %s1318_s7 = sshll.u32 %s1433_s20, 4  ;;  %s1319_s7 = int_to_ptr.vmem [resolvable:$false] %s1318_s7 }
  0x49   : > { %s1320_s1 = scalar_lea.vmem %s1319_s7, 1024  ;;  %p1321_p0 = scmp.lt.s32.totalorder %s1590_s22, %s1319_s7 }
  0x4a   : > { %p1316_p9 = pnand %p1314_p6, %p1549_p2  ;;  %p1322_p11 = scmp.lt.s32.totalorder %s1320_s1, %s1313_s28 }
  0x4c   : > { %p1317_p12 = pneg %p1316_p9  ;;  %p1323_p8 = por %p1322_p11, %p1321_p0 }
  0x4e   : > { %p1324_p10 = pnand %p1323_p8, %p1317_p12 }
  0x50   : > { %1327 = shalt.err (!%p1324_p10)
}
  0x51   : > { %s1795_s13 = smov 8   ;;  %s1796_s23 = smov 128  }
  0x52   : > { %1200 = dma.hbm_to_vmem [thread:$0]  (!%p1528_p13), %s1581_s6, 512, %s1590_s22, %s1594_s9, %s1796_s23, %s1796_s23, %s1795_s13  }
  0x53   : > { %s1625_s20 = scalar_lea.hbm %s1775_s2, %s1522_s29  ;;  %s215_s28 = scalar_lea.vmem [#allocation7], %s1526_s30 }
  0x54   : > { %s222_s7 = sshll.u32 %s215_s28, 4  ;;  %s1328_s1 = scalar_lea.hbm %s1625_s20, 512  ;;  %s1628_s7 = int_to_ptr.vmem [resolvable:$true] %s222_s7 }
  0x55   : > { %p1329_p11 = scmp.ne.s32.totalorder %s1625_s20, %s1328_s1  ;;  %s1333_s22 = scalar_lea.hbm %s1775_s2, 1024 }
  0x56   : > { %p1334_p3 = scmp.lt.u32.totalorder %s1625_s20, %s1775_s2  ;;  %p1335_p5 = scmp.lt.u32.totalorder %s1333_s22, %s1328_s1 }
  0x57   : > { %p1331_p4 = pnand %p1329_p11, %p1549_p2  ;;  %p1337_p6 = scmp.lt.u32.totalorder %s1328_s1, %s1625_s20 }
  0x58   : > { %p1336_p7 = por %p1335_p5, %p1334_p3 }
  0x59   : > { %p1332_p1 = pneg %p1331_p4 }
  0x5a   : > { %p1338_p9 = por %p1337_p6, %p1336_p7 }
  0x5c   : > { %p1339_p12 = pnand %p1338_p9, %p1332_p1 }
  0x5e   : > { %1342 = shalt.err (!%p1339_p12)
}
  0x5f   : > { %s1343_s30 = scalar_lea.vmem %s1628_s7, 512  ;;  %s1434_s0 = smov [#allocation7]  }
  0x60   : > { %p1344_p0 = scmp.ne.s32.totalorder %s1628_s7, %s1343_s30  ;;  %s1348_s11 = sshll.u32 %s1434_s0, 4  ;;  %s1349_s11 = int_to_ptr.vmem [resolvable:$false] %s1348_s11 }
  0x61   : > { %s1350_s8 = scalar_lea.vmem %s1349_s11, 1024  ;;  %p1351_p11 = scmp.lt.s32.totalorder %s1628_s7, %s1349_s11 }
  0x62   : > { %p1346_p8 = pnand %p1344_p0, %p1549_p2  ;;  %p1352_p4 = scmp.lt.s32.totalorder %s1350_s8, %s1343_s30 }
  0x64   : > { %p1347_p10 = pneg %p1346_p8  ;;  %p1353_p3 = por %p1352_p4, %p1351_p11 }
  0x66   : > { %p1354_p5 = pnand %p1353_p3, %p1347_p10 }
  0x68   : > { %1357 = shalt.err (!%p1354_p5)
}
  0x69   : > { %1206 = dma.hbm_to_vmem [thread:$0]  (!%p1528_p13), %s1625_s20, 512, %s1628_s7, %s1543_s12, %s1796_s23, %s1796_s23, %s1795_s13  }
  0x6a   : > { %p1797_p2 = scmp.ne.s32.totalorder %s1794_s10, 0 }
  0x6b   : > { %s1658_s14 = sand.u32 (!%p1797_p2), 1, %s1420_s16   ;;  %p1798_p1 = scmp.ne.s32.totalorder (!%p1797_p2), %s1786_s25, 0 }
  0x6c   : > { %234 = sbr.rel (%p1797_p2) target bundleno = 850 (0x352), region = 36  ;;  %s1661_s28 = sshll.u32 (!%p1797_p2), %s1658_s14, 5 }
  0x6d   : > { %s237_s5 = scalar_lea.sflag (!%p1797_p2), [#allocation3], %s1658_s14  ;;  %s240_s1 = scalar_lea.vmem (!%p1797_p2), [#allocation2], %s1661_s28 }
  0x73   : > { %1403 = dma.done.wait (%p1798_p1), %s237_s5, 512  }
  0x74   : > { %1405 = vsyncadd (%p1798_p1), %s237_s5, 4294966784  ;;  %s245_s12 = sand.u32 1, %s1487_s19   ;;  %s249_s13 = scalar_lea.vmem [#allocation5], %s1661_s28 }
  0x75   : > { %s246_s10 = scalar_lea.sflag [#allocation6], %s245_s12 }
  0x76   : > { %1407 = dma.done.wait (%p1798_p1), %s246_s10, 1024  }
  0x77   : > { %1409 = vsyncadd (%p1798_p1), %s246_s10, 4294966272  ;;  %v1435_v0 = vmov 0.0   ;;  %vm1436_vm0 = vmmov 0   ;;  %vm306_vm1 = vcmask 261120   ;;  %v301_v1 = vld [vmem:[%s249_s13] sm:$0xff]  ;;  %v302_v3 = vld [vmem:[%s249_s13 + $0x8] sm:$0xff] }
  0x78   : > { %1149 = vmatprep.subr.mxu0 %v1435_v0  ;;  %1151 = vmatprep.mubr.msk.f32.mxu0 %vm1436_vm0, %v1435_v0  ;;  %v293_v2 = vld [vmem:[%s240_s1] sm:$0xff]  ;;  %v294_v5 = vld [vmem:[%s240_s1 + $0x8] sm:$0xff]  ;;  %v295_v6 = vld [vmem:[%s240_s1 + $0x10] sm:$0xff]  ;;  %vm611_vm2 = vcmask 64512   ;;  %s258_s20 = scalar_lea.vmem [#allocation7], %s1661_s28  ;;  %s1437_s7 = smov 32  }
  0x79   : > { %1154 = vmatprep.subr.mxu1 %v1435_v0  ;;  %1156 = vmatprep.mubr.msk.f32.mxu1 %vm1436_vm0, %v1435_v0  ;;  %v297_v4 = vmul.f32 0.17677669, %v293_v2  ;;  %v303_v7 = vld [vmem:[%s249_s13 + $0x10] sm:$0xff]  ;;  %v298_v8 = vmul.f32 0.17677669, %v294_v5  ;;  %v296_v9 = vld [vmem:[%s240_s1 + $0x18] sm:$0xff] }
  0x7a   : > { %1150 = vmatpush3.xpose.msk.msra.mxu0 %vm306_vm1, %v301_v1  ;;  %1155 = vmatpush3.xpose.msk.msra.mxu1 %vm306_vm1, %v302_v3  ;;  %v304_v10 = vld [vmem:[%s249_s13 + $0x18] sm:$0xff]  ;;  %v299_v11 = vmul.f32 0.17677669, %v295_v6  ;;  %v300_v12 = vmul.f32 0.17677669, %v296_v9  ;;  %v305_v13 = vld [vmem:[%s1776_s3] sm:$0xff] }
  0x7b   : > { %1159 = vmatprep.subr.mxu0 %v1435_v0  ;;  %1164 = vmatprep.subr.mxu1 %v1435_v0  ;;  %v652_v30 = vld [vmem:[%s258_s20] sm:$0xff]  ;;  %v653_v31 = vld [vmem:[%s258_s20 + $0x8] sm:$0xff]  ;;  %v654_v44 = vld [vmem:[%s258_s20 + $0x10] sm:$0xff]  ;;  %s1438_s6 = smov 64   ;;  %s1439_s22 = smov 96   ;;  %vm965_vm3 = vcmask 523264  }
  0x7c   : > { %v655_v46 = vld [vmem:[%s258_s20 + $0x18] sm:$0xff]  ;;  %s1113_s9 = sshll.u32 %s1658_s14, 3  ;;  %s1127_s29 = sshll.u32 %s1487_s19, 7  ;;  %vm967_vm4 = vcmask 785408  }
  0x7d   : > { %1152 = vmatmul.mubr.msk.f32.vlgmr.msra.gmra.mrb[0].mxu0 %vm306_vm1, %v297_v4  ;;  %1157 = vmatmul.mubr.msk.f32.vlgmr.msra.gmra.mrb[0].mxu1 %vm306_vm1, %v298_v8  ;;  %s292_s30 = scalar_lea.vmem [#allocation8], %s1113_s9  ;;  %s1729_s28 = scalar_lea.hbm %s1777_s4, %s1127_s29 }
  0x7e   : > { %1160 = vmatpush3.xpose.msk.msra.mxu0 %vm306_vm1, %v303_v7  ;;  %1161 = vmatprep.mubr.msk.f32.mxu0 %vm1436_vm0, %v1435_v0  ;;  %s984_s0 = sshll.u32 %s292_s30, 4  ;;  %s971_s5 = scalar_lea.sflag [#allocation4], %s1658_s14  ;;  %s1731_s0 = int_to_ptr.vmem [resolvable:$true] %s984_s0 }
  0x7f   : > { %1165 = vmatpush3.xpose.msk.msra.mxu1 %vm306_vm1, %v304_v10  ;;  %1166 = vmatprep.mubr.msk.f32.mxu1 %vm1436_vm0, %v1435_v0  ;;  %s1358_s1 = scalar_lea.vmem %s1731_s0, 128  ;;  %p1799_p7 = scmp.ne.s32.totalorder %s1787_s26, 0 }
  0x80   : > { %1169 = vmatprep.subr.mxu0 %v1435_v0  ;;  %1174 = vmatprep.subr.mxu1 %v1435_v0  ;;  %p1359_p13 = scmp.ne.s32.totalorder %s1731_s0, %s1358_s1  ;;  %s1440_s19 = smov [#allocation8]  }
  0x81   : > { %1162 = vmatmul.mubr.msk.f32.vlgmr.msra.gmra.mrb[2].mxu0 %vm306_vm1, %v299_v11  ;;  %s1362_s12 = sshll.u32 %s1440_s19, 4  ;;  %s1363_s12 = int_to_ptr.vmem [resolvable:$false] %s1362_s12 }
  0x82   : > { %1167 = vmatmul.mubr.msk.f32.vlgmr.msra.gmra.mrb[2].mxu1 %vm306_vm1, %v300_v12  ;;  %1171 = vmatprep.mubr.msk.f32.mxu0 %vm1436_vm0, %v1435_v0  ;;  %p1360_p6 = pnand %p1359_p13, %p1799_p7  ;;  %s1364_s10 = scalar_lea.vmem %s1363_s12, 256 }
  0x83   : > { %1176 = vmatprep.mubr.msk.f32.mxu1 %vm1436_vm0, %v1435_v0  ;;  %1170 = vmatpush3.msra.mxu0 %v652_v30  ;;  %p1365_p12 = scmp.lt.s32.totalorder %s1731_s0, %s1363_s12  ;;  %p1366_p0 = scmp.lt.s32.totalorder %s1364_s10, %s1358_s1 }
  0x84   : > { %1179 = vmatprep.subr.mxu0 %v1435_v0  ;;  %1175 = vmatpush3.msra.mxu1 %v653_v31  ;;  %p1361_p9 = pneg %p1360_p6 }
  0x85   : > { %1184 = vmatprep.subr.mxu1 %v1435_v0  ;;  %p1367_p8 = por %p1366_p0, %p1365_p12 }
  0x87   : > { %p1368_p10 = pnand %p1367_p8, %p1361_p9 }
 0x150   : > { %v379_v14 = vpop.f32.mrb[0].mxu0  ;;  %v455_v15 = vpop.f32.mrb[0].mxu1 }
 0x151   : > { %v380_v16 = vadd.f32 %v379_v14, %v305_v13  ;;  %v1153_v17 = vpop.f32.mrb[1].mxu0  ;;  %v456_v18 = vadd.f32 %v455_v15, %v305_v13  ;;  %v1158_v19 = vpop.f32.mrb[1].mxu1 }
 0x153   : > { %v612_v20 = vsel %vm611_vm2, %v380_v16, -inf  ;;  %v615_v25 = vsel %vm611_vm2, %v456_v18, -inf }
 0x154   : > { %613 = vmax.xlane.f32.xlu0 %v612_v20  ;;  %v531_v21 = vpop.f32.mrb[2].mxu0 }
 0x155   : > { %v532_v22 = vadd.f32 %v531_v21, %v305_v13  ;;  %v1163_v23 = vpop.f32.mrb[3].mxu0  ;;  %v607_v24 = vpop.f32.mrb[2].mxu1 }
 0x156   : > { %v608_v26 = vadd.f32 %v607_v24, %v305_v13  ;;  %v1168_v27 = vpop.f32.mrb[3].mxu1 }
 0x157   : > { %v618_v28 = vsel %vm611_vm2, %v532_v22, -inf }
 0x158   : > { %616 = vmax.xlane.f32.xlu0 %v615_v25  ;;  %619 = vmax.xlane.f32.xlu1 %v618_v28  ;;  %v621_v29 = vsel %vm611_vm2, %v608_v26, -inf }
 0x15c   : > { %622 = vmax.xlane.f32.xlu1 %v621_v29 }
 0x1e1   : > { %v614_v32 = vpop.xlane.xlu0 %613 }
 0x1e2   : > { %v624_v33 = vsub.f32 %v380_v16, %v614_v32 }
 0x1e4   : > { %v628_v34 = vmul.f32 1.442695, %v624_v33 }
 0x1e5   : > { %v617_v35 = vpop.xlane.xlu0 %616  ;;  %v620_v36 = vpop.xlane.xlu1 %619 }
 0x1e6   : > { %1252 = vpow2.f32 %v628_v34  ;;  %v625_v37 = vsub.f32 %v456_v18, %v617_v35  ;;  %v626_v38 = vsub.f32 %v532_v22, %v620_v36 }
 0x1e8   : > { %v630_v39 = vmul.f32 1.442695, %v625_v37  ;;  %v632_v40 = vmul.f32 1.442695, %v626_v38 }
 0x1e9   : > { %v623_v41 = vpop.xlane.xlu1 %622 }
 0x1ea   : > { %1254 = vpow2.f32 %v630_v39  ;;  %v627_v42 = vsub.f32 %v608_v26, %v623_v41 }
 0x1eb   : > { %1256 = vpow2.f32 %v632_v40 }
 0x1ec   : > { %v634_v43 = vmul.f32 1.442695, %v627_v42 }
 0x1ee   : > { %1258 = vpow2.f32 %v634_v43 }
 0x1f0   : > { %v1253_v45 = vpop.eup %1252 }
 0x1f1   : > { %1172 = vmatmul.mubr.msk.f32.vlgmr.msra.gmra.mrb[4].mxu0 %vm611_vm2, %v1253_v45  ;;  %v636_v53 = vsel %vm611_vm2, %v1253_v45, 0.0 }
 0x1f2   : > { %1180 = vmatpush3.msra.mxu0 %v654_v44  ;;  %1181 = vmatprep.mubr.msk.f32.mxu0 %vm1436_vm0, %v1435_v0 }
 0x1f4   : > { %v1255_v47 = vpop.eup %1254 }
 0x1f5   : > { %v1257_v48 = vpop.eup %1256  ;;  %1177 = vmatmul.mubr.msk.f32.vlgmr.msra.gmra.mrb[4].mxu1 %vm611_vm2, %v1255_v47  ;;  %v639_v49 = vsel %vm611_vm2, %v1255_v47, 0.0 }
 0x1f6   : > { %1182 = vmatmul.mubr.msk.f32.vlgmr.msra.gmra.mrb[6].mxu0 %vm611_vm2, %v1257_v48  ;;  %1185 = vmatpush3.msra.mxu1 %v655_v46  ;;  %v642_v50 = vsel %vm611_vm2, %v1257_v48, 0.0 }
 0x1f7   : > { %640 = vadd.xlane.f32.xlu0 %v639_v49  ;;  %643 = vadd.xlane.f32.xlu1 %v642_v50 }
 0x1f8   : > { %v1259_v51 = vpop.eup %1258  ;;  %1186 = vmatprep.mubr.msk.f32.mxu1 %vm1436_vm0, %v1435_v0 }
 0x1f9   : > { %1187 = vmatmul.mubr.msk.f32.vlgmr.msra.gmra.mrb[6].mxu1 %vm611_vm2, %v1259_v51  ;;  %v645_v52 = vsel %vm611_vm2, %v1259_v51, 0.0 }
 0x1fb   : > { %637 = vadd.xlane.f32.xlu1 %v636_v53  ;;  %646 = vadd.xlane.f32.xlu0 %v645_v52 }
 0x284   : > { %v641_v54 = vpop.xlane.xlu0 %640  ;;  %v644_v55 = vpop.xlane.xlu1 %643 }
 0x285   : > { %1260 = vrcp.f32 %v641_v54 }
 0x286   : > { %1262 = vrcp.f32 %v644_v55 }
 0x288   : > { %v647_v56 = vpop.xlane.xlu0 %646  ;;  %v638_v7 = vpop.xlane.xlu1 %637 }
 0x289   : > { %1264 = vrcp.f32 %v647_v56 }
 0x28a   : > { %1266 = vrcp.f32 %v638_v7 }
 0x28f   : > { %v1261_v59 = vpop.eup %1260 }
 0x290   : > { %v1263_v61 = vpop.eup %1262 }
 0x293   : > { %v1265_v3 = vpop.eup %1264 }
 0x294   : > { %v1267_v8 = vpop.eup %1266 }
 0x2c4   : > { %v725_v57 = vpop.f32.mrb[4].mxu0 }
 0x2c5   : > { %v1173_v58 = vpop.f32.mrb[5].mxu0  ;;  %v729_v9 = vmul.f32 %v1267_v8, %v725_v57 }
 0x2c8   : > { %v799_v60 = vpop.f32.mrb[4].mxu1 }
 0x2c9   : > { %v803_v62 = vmul.f32 %v1261_v59, %v799_v60  ;;  %v873_v63 = vpop.f32.mrb[6].mxu0  ;;  %v1178_v0 = vpop.f32.mrb[5].mxu1 }
 0x2ca   : > { %v877_v1 = vmul.f32 %v1263_v61, %v873_v63  ;;  %v1183_v2 = vpop.f32.mrb[7].mxu0 }
 0x2cb   : > { %953 = vrot.lane.b32.xlu0 %v803_v62, %s1437_s7 }
 0x2cc   : > { %957 = vrot.lane.b32.xlu1 %v877_v1, %s1438_s6  ;;  %v947_v4 = vpop.f32.mrb[6].mxu1 }
 0x2cd   : > { %v951_v5 = vmul.f32 %v1265_v3, %v947_v4  ;;  %v1188_v6 = vpop.f32.mrb[7].mxu1 }
 0x2d0   : > { %961 = vrot.lane.b32.xlu1 %v951_v5, %s1439_s22 }
 0x33d   : > { %v954_v10 = vpop.permute.xlu0 %953 }
 0x33e   : > { %v958_v11 = vpop.permute.xlu1 %957  ;;  %v964_v12 = vsel %vm306_vm1, %v729_v9, %v954_v10 }
 0x33f   : > { %v966_v13 = vsel %vm965_vm3, %v964_v12, %v958_v11 }
 0x342   : > { %v962_v14 = vpop.permute.xlu1 %961 }
 0x343   : > { %v968_v15 = vsel %vm967_vm4, %v966_v13, %v962_v14 }
 0x344   : > { %969 = vst [vmem:[%s292_s30] sm:$0xff] %v968_v15 }
 0x345   : > { %1371 = shalt.err (!%p1368_p10)
}
 0x346   : > { %s1372_s14 = scalar_lea.hbm %s1729_s28, 128  ;;  %s1376_s23 = scalar_lea.hbm %s1777_s4, 256 }
 0x347   : > { %p1373_p11 = scmp.ne.s32.totalorder %s1729_s28, %s1372_s14  ;;  %p1377_p5 = scmp.lt.u32.totalorder %s1729_s28, %s1777_s4 }
 0x348   : > { %p1378_p2 = scmp.lt.u32.totalorder %s1376_s23, %s1372_s14  ;;  %p1380_p13 = scmp.lt.u32.totalorder %s1372_s14, %s1729_s28 }
 0x349   : > { %p1374_p4 = pnand %p1373_p11, %p1799_p7 }
 0x34a   : > { %p1379_p1 = por %p1378_p2, %p1377_p5 }
 0x34b   : > { %p1375_p3 = pneg %p1374_p4 }
 0x34c   : > { %p1381_p6 = por %p1380_p13, %p1379_p1 }
 0x34e   : > { %p1382_p9 = pnand %p1381_p6, %p1375_p3 }
 0x350   : > { %1385 = shalt.err (!%p1382_p9)
}
 0x351   : > { %1195 = dma.vmem_to_hbm [thread:$0]  (%p1799_p7), %s1731_s0, 128, %s1729_s28, %s971_s5  }
 0x352 PF: > { %s996_s6 = sand.u32 1, %s1416_s15   ;;  %p1800_p12 = scmp.ne.s32.totalorder %s1788_s27, 0 }
 0x353   : > { %p1801_p0 = scmp.ge.s32.totalorder %s1428_s18, 2  ;;  %s997_s22 = scalar_lea.sflag [#allocation4], %s996_s6 }
 0x355   : > { %p1208_p8 = pnand %p1801_p0, %p1800_p12 }
 0x357   : > { %1411 = dma.done.wait (!%p1208_p8), %s997_s22, 128  }
 0x358   : > { %1413 = vsyncadd (!%p1208_p8), %s997_s22, 4294967168  ;;  %p20_p10 = scmp.ge.s32.totalorder %s1491_s21, 4   ;;  %s1802_s15 = smov %s1420_s16 }
 0x359   : > { %s1803_s16 = smov %s1424_s17  ;;  %s1804_s17 = smov %s1503_s24 }
 0x35a   : > { %s1805_s18 = smov %s1491_s21  ;;  %22 = sbr.rel (!%p20_p10) target bundleno = 10 (0xa), region = 105 }
 0x361   :  { %1002 = vsyncpa [#allocation3], 1 }
 0x362   :  { %1004 = vsyncpa [#allocation3 + $0x1], 1 }
 0x363   :  { %1005 = vsyncpa [#allocation6], 1 }
 0x364   :  { %1007 = vsyncpa [#allocation6 + $0x1], 1 }
 0x365   :  { %1008 = vsyncpa [#allocation4], 1 }
 0x366   :  { %1010 = vsyncpa [#allocation4 + $0x1], 1 }

</bundles_post_ra>
